<compile_context>
chip_gen: v5e
topology: v5e:2x2
jax: 0.10.0
libtpu: 0.0.40
codegen_flags: <defaults>
</compile_context>

<pallas_src>
import jax
import jax.numpy as jnp
from jax.experimental import pallas as pl
from jax.experimental.pallas import tpu as pltpu


def head_kernel(xq_ref, xkv_ref, wq_ref, wk_ref, wv_ref, o_ref):
    # xq_ref : (1, tq, C)  query-row tile of x
    # xkv_ref: (1, T,  C)  full sequence of x for this batch element (keys/values)
    # w*_ref : (C, hs)     resident projection weights
    # o_ref  : (1, tq, hs)
    i = pl.program_id(1)
    tq = xq_ref.shape[1]
    T = xkv_ref.shape[1]
    cdt = xq_ref.dtype          # MXU operand dtype (bf16-native if inputs are bf16)

    xq = xq_ref[0]              # (tq, C)
    xkv = xkv_ref[0]            # (T, C)

    # Projections (f32 accumulation on the MXU).
    q = jnp.dot(xq, wq_ref[...], preferred_element_type=jnp.float32).astype(cdt)
    k = jnp.dot(xkv, wk_ref[...], preferred_element_type=jnp.float32).astype(cdt)
    v = jnp.dot(xkv, wv_ref[...], preferred_element_type=jnp.float32).astype(cdt)

    # Attention scores; NOTE: no 1/sqrt(head_size) scaling, matching the reference.
    s = jnp.dot(q, k.T, preferred_element_type=jnp.float32)            # (tq, T)

    # Causal mask: global query row i*tq + r attends to columns <= that row.
    row = jax.lax.broadcasted_iota(jnp.int32, (tq, T), 0) + i * tq
    col = jax.lax.broadcasted_iota(jnp.int32, (tq, T), 1)
    s = jnp.where(col <= row, s, -jnp.inf)

    # Numerically stable softmax along the key axis.
    m = jnp.max(s, axis=-1, keepdims=True)
    e = jnp.exp(s - m)
    p = e / jnp.sum(e, axis=-1, keepdims=True)

    out = jnp.dot(p.astype(cdt), v, preferred_element_type=jnp.float32)
    o_ref[0] = out.astype(o_ref.dtype)


def head_attention(x, wq, wk, wv, *, tq=256):
    """Single causal attention head.

    x : (B, T, C); wq/wk/wv : (C, head_size) (transpose of the PyTorch Linear weight).
    Returns (B, T, head_size).
    """
    B, T, C = x.shape
    hs = wq.shape[1]
    tq = min(tq, T)                      # query-row tile (full T when T is small)
    nq = pl.cdiv(T, tq)
    itemsize = x.dtype.itemsize

    # VMEM budget: double-buffered x tiles + single-buffered weights + output tile,
    # with headroom for the f32 score / probability / q,k,v intermediates.
    vmem_needed = (
        2 * tq * C * itemsize            # query tile (double-buffered)
        + 2 * T * C * itemsize           # key/value slab (double-buffered)
        + 3 * C * hs * itemsize          # weights (single-buffered)
        + 2 * tq * hs * itemsize         # output tile (double-buffered)
        + 4 * tq * T * 4                 # scores / exp / probs (f32)
        + 3 * T * max(hs, C) * 4         # q / k / v intermediates (f32)
    )
    vmem_limit = int(min(64 * 2**20, max(32 * 2**20, 2 * vmem_needed)))

    cost = pl.CostEstimate(
        flops=B * (3 * 2 * T * C * hs + 2 * 2 * T * T * hs),
        transcendentals=B * T * T,
        bytes_accessed=(2 * B * T * C + 3 * C * hs + B * T * hs) * itemsize,
    )

    def weight_spec():
        # Constant block index -> single buffer is enough (saves VMEM at scale).
        return pl.BlockSpec((C, hs), lambda b, i: (0, 0),
                            pipeline_mode=pl.Buffered(1))

    return pl.pallas_call(
        head_kernel,
        out_shape=jax.ShapeDtypeStruct((B, T, hs), x.dtype),
        grid_spec=pltpu.PrefetchScalarGridSpec(
            num_scalar_prefetch=0,
            grid=(B, nq),
            in_specs=[
                pl.BlockSpec((1, tq, C), lambda b, i: (b, i, 0)),   # query rows
                pl.BlockSpec((1, T, C), lambda b, i: (b, 0, 0)),    # full seq for K/V
                weight_spec(),                                      # Wq (resident)
                weight_spec(),                                      # Wk (resident)
                weight_spec(),                                      # Wv (resident)
            ],
            out_specs=pl.BlockSpec((1, tq, hs), lambda b, i: (b, i, 0)),
        ),
        compiler_params=pltpu.CompilerParams(
            dimension_semantics=("parallel", "parallel"),
            vmem_limit_bytes=vmem_limit,
        ),
        cost_estimate=cost,
    )(x, x, wq, wk, wv)


if __name__ == "__main__":
    # Small shapes consistent with the module: batch=2, seq=8, n_embedding=32.
    B, T, C = 2, 8, 32
    head_size = 16

    key = jax.random.PRNGKey(0)
    kx, kq, kk, kv = jax.random.split(key, 4)

    x = jax.random.normal(kx, (B, T, C), dtype=jnp.float32)
    # PyTorch Linear weight is (out, in); the kernel takes the (in, out) transpose.
    wq = jax.random.normal(kq, (C, head_size), dtype=jnp.float32) * 0.02
    wk = jax.random.normal(kk, (C, head_size), dtype=jnp.float32) * 0.02
    wv = jax.random.normal(kv, (C, head_size), dtype=jnp.float32) * 0.02

    out = head_attention(x, wq, wk, wv)
    jax.block_until_ready(out)

    # Plain-JAX reference (same semantics as the PyTorch Head.forward).
    q = x @ wq
    k = x @ wk
    v = x @ wv
    wei = jnp.einsum("btd,bsd->bts", q, k,
                     precision=jax.lax.Precision.HIGHEST)
    mask = jnp.tril(jnp.ones((T, T), dtype=bool))
    wei = jnp.where(mask[None], wei, -jnp.inf)
    wei = jax.nn.softmax(wei, axis=-1)
    ref = jnp.einsum("bts,bsd->btd", wei, v,
                     precision=jax.lax.Precision.HIGHEST)

    assert jnp.allclose(out, ref, atol=1e-4, rtol=1e-4), "mismatch vs reference"
    print("KERNEL_OK")
</pallas_src>

<mosaic_0001>
module attributes {stable_mosaic.version = 11 : i64} {
  func.func @head_kernel(%arg0: i32, %arg1: i32, %arg2: memref<1x8x32xf32, #tpu.memory_space<vmem>>, %arg3: memref<1x8x32xf32, #tpu.memory_space<vmem>>, %arg4: memref<32x16xf32, #tpu.memory_space<vmem>>, %arg5: memref<32x16xf32, #tpu.memory_space<vmem>>, %arg6: memref<32x16xf32, #tpu.memory_space<vmem>>, %arg7: memref<1x8x16xf32, #tpu.memory_space<vmem>>) attributes {dimension_semantics = [#tpu.dimension_semantics<parallel>, #tpu.dimension_semantics<parallel>], iteration_bounds = array<i64: 2, 1>, scalar_prefetch = 0 : i64, scratch_operands = 0 : i64, tpu.core_type = #tpu.core_type<tc>, window_params = [{transform_indices = @transform_0, window_bounds = array<i64: 1, 8, 32>}, {transform_indices = @transform_1, window_bounds = array<i64: 1, 8, 32>}, {pipeline_mode = #tpu.pipeline_mode<synchronous>, transform_indices = @transform_2, window_bounds = array<i64: 32, 16>}, {pipeline_mode = #tpu.pipeline_mode<synchronous>, transform_indices = @transform_3, window_bounds = array<i64: 32, 16>}, {pipeline_mode = #tpu.pipeline_mode<synchronous>, transform_indices = @transform_4, window_bounds = array<i64: 32, 16>}, {transform_indices = @transform_5, window_bounds = array<i64: 1, 8, 16>}]} {
    %c0 = arith.constant 0 : index
    %c0_0 = arith.constant 0 : index
    %c0_1 = arith.constant 0 : index
    %0 = vector.load %arg2[%c0, %c0_0, %c0_1] : memref<1x8x32xf32, #tpu.memory_space<vmem>>, vector<1x8x32xf32>
    %1 = vector.shape_cast %0 : vector<1x8x32xf32> to vector<8x32xf32>
    %c0_2 = arith.constant 0 : index
    %c0_3 = arith.constant 0 : index
    %c0_4 = arith.constant 0 : index
    %2 = vector.load %arg3[%c0_2, %c0_3, %c0_4] : memref<1x8x32xf32, #tpu.memory_space<vmem>>, vector<1x8x32xf32>
    %3 = vector.shape_cast %2 : vector<1x8x32xf32> to vector<8x32xf32>
    %c0_5 = arith.constant 0 : index
    %c0_6 = arith.constant 0 : index
    %4 = vector.load %arg4[%c0_5, %c0_6] : memref<32x16xf32, #tpu.memory_space<vmem>>, vector<32x16xf32>
    %cst = arith.constant dense<0.000000e+00> : vector<8x16xf32>
    %5 = tpu.matmul %1, %4, %cst {dimension_numbers = #tpu.dot_dimension_numbers<[1], [0], [0], [1], [0, 0, 1, 1], [], []>} : vector<8x32xf32>, vector<32x16xf32>, vector<8x16xf32> -> vector<8x16xf32>
    %c0_7 = arith.constant 0 : index
    %c0_8 = arith.constant 0 : index
    %6 = vector.load %arg5[%c0_7, %c0_8] : memref<32x16xf32, #tpu.memory_space<vmem>>, vector<32x16xf32>
    %cst_9 = arith.constant dense<0.000000e+00> : vector<8x16xf32>
    %7 = tpu.matmul %3, %6, %cst_9 {dimension_numbers = #tpu.dot_dimension_numbers<[1], [0], [0], [1], [0, 0, 1, 1], [], []>} : vector<8x32xf32>, vector<32x16xf32>, vector<8x16xf32> -> vector<8x16xf32>
    %c0_10 = arith.constant 0 : index
    %c0_11 = arith.constant 0 : index
    %8 = vector.load %arg6[%c0_10, %c0_11] : memref<32x16xf32, #tpu.memory_space<vmem>>, vector<32x16xf32>
    %cst_12 = arith.constant dense<0.000000e+00> : vector<8x16xf32>
    %9 = tpu.matmul %3, %8, %cst_12 {dimension_numbers = #tpu.dot_dimension_numbers<[1], [0], [0], [1], [0, 0, 1, 1], [], []>} : vector<8x32xf32>, vector<32x16xf32>, vector<8x16xf32> -> vector<8x16xf32>
    %10 = tpu.transpose %7, [1, 0] : vector<8x16xf32> -> vector<16x8xf32>
    %cst_13 = arith.constant dense<0.000000e+00> : vector<8x8xf32>
    %11 = tpu.matmul %5, %10, %cst_13 {dimension_numbers = #tpu.dot_dimension_numbers<[1], [0], [0], [1], [0, 0, 1, 1], [], []>} : vector<8x16xf32>, vector<16x8xf32>, vector<8x8xf32> -> vector<8x8xf32>
    %12 = tpu.iota {dimensions = array<i32: 0>} : vector<8x8xi32>
    %c8_i32 = arith.constant 8 : i32
    %13 = arith.muli %arg1, %c8_i32 : i32
    %14 = vector.broadcast %13 : i32 to vector<8x8xi32>
    %15 = arith.addi %12, %14 : vector<8x8xi32>
    %16 = tpu.iota {dimensions = array<i32: 1>} : vector<8x8xi32>
    %17 = arith.cmpi sle, %16, %15 : vector<8x8xi32>
    %cst_14 = arith.constant 0xFF800000 : f32
    %18 = vector.broadcast %cst_14 : f32 to vector<8x8xf32>
    %19 = arith.select %17, %11, %18 : vector<8x8xi1>, vector<8x8xf32>
    %cst_15 = arith.constant dense<0xFF800000> : vector<8xf32>
    %20 = vector.multi_reduction <maximumf>, %19, %cst_15 [1] : vector<8x8xf32> to vector<8xf32>
    %21 = vector.shape_cast %20 : vector<8xf32> to vector<8x1xf32>
    %22 = vector.broadcast %21 : vector<8x1xf32> to vector<8x8xf32>
    %23 = arith.subf %19, %22 : vector<8x8xf32>
    %24 = math.exp %23 : vector<8x8xf32>
    %cst_16 = arith.constant dense<0.000000e+00> : vector<8xf32>
    %25 = vector.multi_reduction <add>, %24, %cst_16 [1] : vector<8x8xf32> to vector<8xf32>
    %26 = vector.shape_cast %25 : vector<8xf32> to vector<8x1xf32>
    %27 = vector.broadcast %26 : vector<8x1xf32> to vector<8x8xf32>
    %28 = arith.divf %24, %27 : vector<8x8xf32>
    %cst_17 = arith.constant dense<0.000000e+00> : vector<8x16xf32>
    %29 = tpu.matmul %28, %9, %cst_17 {dimension_numbers = #tpu.dot_dimension_numbers<[1], [0], [0], [1], [0, 0, 1, 1], [], []>} : vector<8x8xf32>, vector<8x16xf32>, vector<8x16xf32> -> vector<8x16xf32>
    %c0_18 = arith.constant 0 : index
    %c0_19 = arith.constant 0 : index
    %c0_20 = arith.constant 0 : index
    %30 = vector.load %arg7[%c0_18, %c0_19, %c0_20] : memref<1x8x16xf32, #tpu.memory_space<vmem>>, vector<1x8x16xf32>
    %31 = vector.shape_cast %30 : vector<1x8x16xf32> to vector<8x16xf32>
    %32 = vector.shape_cast %29 : vector<8x16xf32> to vector<1x8x16xf32>
    tpu.vector_store %arg7[%c0_18, %c0_19, %c0_20], %32 {strides = array<i32>} : memref<1x8x16xf32, #tpu.memory_space<vmem>>, vector<1x8x16xf32>,
    return
  }
  func.func @transform_0(%arg0: i32, %arg1: i32) -> (i32, i32, i32) {
    %c0_i32 = arith.constant 0 : i32
    %c0_i32_0 = arith.constant 0 : i32
    return %arg0, %arg1, %c0_i32 : i32, i32, i32
  }
  func.func @transform_1(%arg0: i32, %arg1: i32) -> (i32, i32, i32) {
    %c0_i32 = arith.constant 0 : i32
    %c0_i32_0 = arith.constant 0 : i32
    %c0_i32_1 = arith.constant 0 : i32
    return %arg0, %c0_i32, %c0_i32_0 : i32, i32, i32
  }
  func.func @transform_2(%arg0: i32, %arg1: i32) -> (i32, i32) {
    %c0_i32 = arith.constant 0 : i32
    %c0_i32_0 = arith.constant 0 : i32
    %c0_i32_1 = arith.constant 0 : i32
    return %c0_i32, %c0_i32_0 : i32, i32
  }
  func.func @transform_3(%arg0: i32, %arg1: i32) -> (i32, i32) {
    %c0_i32 = arith.constant 0 : i32
    %c0_i32_0 = arith.constant 0 : i32
    %c0_i32_1 = arith.constant 0 : i32
    return %c0_i32, %c0_i32_0 : i32, i32
  }
  func.func @transform_4(%arg0: i32, %arg1: i32) -> (i32, i32) {
    %c0_i32 = arith.constant 0 : i32
    %c0_i32_0 = arith.constant 0 : i32
    %c0_i32_1 = arith.constant 0 : i32
    return %c0_i32, %c0_i32_0 : i32, i32
  }
  func.func @transform_5(%arg0: i32, %arg1: i32) -> (i32, i32, i32) {
    %c0_i32 = arith.constant 0 : i32
    %c0_i32_0 = arith.constant 0 : i32
    return %arg0, %arg1, %c0_i32 : i32, i32, i32
  }
}

</mosaic_0001>

<bundles_post_ra>
// kernel: tpu_custom_call.1
= control target key start
LH: loop header
LB: loop body
LE: loop exit
PB: predicated region body
PF: predicated region fallthrough
CT: control target
= control target key end

     0   :  { %10 = vsyncpa [#allocation3], 0  ;;  %s860_s0 = inlined_call_operand.vmem [shape: f32[2,8,32], index: 0, kind: input, shape index: {}]   ;;  %s861_s1 = inlined_call_operand.vmem [shape: f32[2,8,32], index: 1, kind: input, shape index: {}]   ;;  %s862_s2 = inlined_call_operand.vmem [shape: f32[32,16], index: 2, kind: input, shape index: {}]   ;;  %s863_s3 = inlined_call_operand.vmem [shape: f32[32,16], index: 3, kind: input, shape index: {}]   ;;  %s864_s4 = inlined_call_operand.vmem [shape: f32[32,16], index: 4, kind: input, shape index: {}]   ;;  %s865_s5 = inlined_call_operand.hbm [shape: f32[2,8,16], index: 5, kind: output, shape index: {}]  }
   0x1   :  { %12 = vsyncpa [#allocation3 + $0x1], 0  ;;  %s715_s18 = smov 0   ;;  %s717_s19 = smov 0  }
   0x2   :  { %s719_s20 = smov 0   ;;  %s721_s21 = smov 0  }
   0x3   :  { %s723_s22 = smov 0   ;;  %s725_s23 = smov 0  }
   0x4 LB: > { %s528_s24 = sadd.s32 4294967295, %s683_s23   ;;  %s529_s25 = sadd.s32 4294967294, %s683_s23   ;;  %s683_s23 = sphi %s725_s23, %s18_s23   ;;  %s679_s22 = sphi %s723_s22, %s872_s22   ;;  %s675_s21 = sphi %s721_s21, %s871_s21   ;;  %s671_s20 = sphi %s719_s20, %s870_s20   ;;  %s667_s19 = sphi %s717_s19, %s869_s19   ;;  %s663_s18 = sphi %s715_s18, %s868_s18  }
   0x5   : > { %s30_s26 = sadd.s32 1, %s679_s22  ;;  %s156_s27 = sadd.s32 1, %s671_s20 }
   0x6   : > { %p32_p0 = scmp.ge.s32.totalorder %s30_s26, 2  ;;  %p166_p1 = scmp.ne.s32.totalorder %s671_s20, %s667_s19 }
   0x7   : > { %p167_p2 = scmp.eq.s32.totalorder %s528_s24, 1  ;;  %p172_p3 = scmp.ne.s32.totalorder %s667_s19, %s663_s18 }
   0x8   : > { %s874_s26 = smov (%p32_p0, %s30_s26), 0  ;;  %p173_p5 = scmp.eq.s32.totalorder %s529_s25, 1 }
   0x9   : > { %p755_p4 = por %p167_p2, %p166_p1  ;;  %s151_s29 = ssub.s32 %s679_s22, %s874_s26 }
   0xa   : > { %p532_p6 = scmp.ge.s32.totalorder %s683_s23, 1  ;;  %p154_p7 = scmp.eq.s32.totalorder %s151_s29, 0 }
   0xb   : > { %p762_p8 = por %p173_p5, %p172_p3  ;;  %p217_p9 = scmp.lt.s32.totalorder %s683_s23, 3 }
   0xc   : > { %s768_s6 = scalar_select %p154_p7, %s671_s20, %s156_s27  }
   0xd   : > { %p218_p10 = pnand %p532_p6, %p217_p9 }
   0xe   : > { %p251_p11 = scmp.lt.s32.totalorder (!%p218_p10), %s675_s21, 1  ;;  %s248_s9 = sand.u32 (!%p218_p10), 1, %s667_s19  }
   0xf   : > { %221 = sbr.rel (%p218_p10) target bundleno = 689 (0x2b1), region = 40  ;;  %s533_s10 = sshll.u32 (!%p218_p10), %s248_s9, 3 }
  0x10   : > { %s543_s11 = sshll.u32 (!%p218_p10), %s675_s21, 3  ;;  %s429_s24 = scalar_lea.sflag (!%p218_p10), [#allocation3], %s248_s9 }
  0x11   : > { %s440_s14 = scalar_lea.hbm (!%p218_p10), %s865_s5, %s543_s11 }
  0x12   : > { %s444_s17 = sshll.u32 (!%p218_p10), %s440_s14, 4  ;;  %s445_s17 = int_to_ptr.hbm [resolvable:$true] %s444_s17 }
  0x14   : > { %v295_v0 = vld [vmem:[%s863_s3 + $0x18] sm:$0xff]  ;;  %v294_v1 = vld [vmem:[%s863_s3 + $0x10] sm:$0xff]  ;;  %v293_v4 = vld [vmem:[%s863_s3 + $0x8] sm:$0xff]  ;;  %s252_s25 = scalar_select %p251_p11, %s675_s21, 1  ;;  %vm268_vm0 = vcmask 261120   ;;  %vm343_vm1 = vcmask 130048   ;;  %v370_v12 = vlaneseq }
  0x15   : > { %v267_v2 = vld [vmem:[%s862_s2 + $0x18] sm:$0xff]  ;;  %311 = vmatpush.msra.mxu1 %v295_v0  ;;  %v266_v3 = vld [vmem:[%s862_s2 + $0x10] sm:$0xff]  ;;  %v265_v5 = vld [vmem:[%s862_s2 + $0x8] sm:$0xff]  ;;  %vm379_vm3 = vcmask 64512  }
  0x16   : > { %284 = vmatpush.msra.mxu0 %v267_v2  ;;  %v292_v6 = vld [vmem:[%s863_s3] sm:$0xff]  ;;  %s534_s7 = sshll.u32 %s252_s25, 3  ;;  %v371_v13 = vshrl.u32 %v370_v12, 7  ;;  %v376_v14 = vand.u32 127, %v370_v12  ;;  %v322_v18 = vld [vmem:[%s864_s4 + $0x18] sm:$0xff]  ;;  %v321_v19 = vld [vmem:[%s864_s4 + $0x10] sm:$0xff] }
  0x17   : > { %312 = vmatpush.msra.mxu1 %v294_v1  ;;  %v264_v7 = vld [vmem:[%s862_s2] sm:$0xff]  ;;  %s261_s12 = scalar_lea.vmem %s861_s1, %s534_s7  ;;  %s257_s15 = scalar_lea.vmem %s860_s0, %s534_s7  ;;  %335 = vmatpush.msra.mxu2 %v322_v18  ;;  %v320_v20 = vld [vmem:[%s864_s4 + $0x8] sm:$0xff] }
  0x18   : > { %285 = vmatpush.msra.mxu0 %v266_v3  ;;  %v263_v8 = vld [vmem:[%s261_s12] sm:$0xff]  ;;  %vm377_vm2 = vcmp.le.s32.totalorder %v376_v14, %v371_v13  ;;  %s619_s25 = sshra.s32 %s445_s17, 4  ;;  %s625_s7 = scalar_lea.hbm %s865_s5, 16  ;;  %s620_s25 = int_to_ptr.hbm [resolvable:$true] %s619_s25 }
  0x19   : > { %313 = vmatpush.msra.mxu1 %v293_v4  ;;  %v262_v9 = vld [vmem:[%s257_s15] sm:$0xff]  ;;  %336 = vmatpush.msra.mxu2 %v321_v19  ;;  %s250_s15 = scalar_lea.vmem [#allocation2], %s533_s10  ;;  %s621_s27 = scalar_lea.hbm %s620_s25, 8 }
  0x1a   : > { %286 = vmatpush.msra.mxu0 %v265_v5  ;;  %v319_v21 = vld [vmem:[%s864_s4] sm:$0xff]  ;;  %s442_s16 = sshll.u32 %s250_s15, 4  ;;  %p622_p12 = scmp.ne.s32.totalorder %s620_s25, %s621_s27  ;;  %s443_s16 = int_to_ptr.vmem [resolvable:$true] %s442_s16 }
  0x1b   : > { %314 = vmatpush.msra.mxu1 %v292_v6  ;;  %337 = vmatpush.msra.mxu2 %v320_v20  ;;  %p626_p1 = scmp.lt.s32.totalorder %s620_s25, %s865_s5  ;;  %p627_p2 = scmp.lt.s32.totalorder %s625_s7, %s621_s27 }
  0x1c   : > { %287 = vmatpush.msra.mxu0 %v264_v7  ;;  %537 = vmatmul.msk.f32.vlgmr.msra.gmra.mxu1 %vm268_vm0, %v263_v8  ;;  %p623_p13 = pnand %p622_p12, %p755_p4 }
  0x1d   : > { %536 = vmatmul.msk.f32.vlgmr.msra.gmra.mxu0 %vm268_vm0, %v262_v9  ;;  %338 = vmatpush.msra.mxu2 %v319_v21  ;;  %p628_p3 = por %p627_p2, %p626_p1 }
  0x1e   : > { %538 = vmatmul.msk.f32.vlgmr.msra.gmra.mxu2 %vm268_vm0, %v263_v8  ;;  %p624_p0 = pneg %p623_p13 }
  0x20   : > { %p629_p5 = pnand %p628_p3, %p624_p0 }
  0x99   : > { %v316_v10 = vpop.f32.mrf.mxu1 }
  0x9a   : > { %539 = vmatpush.xpose.msk.msra.mxu3 %vm343_vm1, %v316_v10  ;;  %v289_v11 = vpop.f32.mrf.mxu0 }
  0x9d   : > { %540 = vmatmul.msk.f32.vlgmr.msra.gmra.mxu3 %vm343_vm1, %v289_v11 }
  0xa1   : > { %v340_v27 = vpop.f32.mrf.mxu2 }
  0xa2   : > { %422 = vmatpush.msrb.mxu3 %v340_v27 }
 0x120   : > { %v367_v15 = vpop.f32.mrf.mxu3 }
 0x121   : > { %v378_v16 = vsel %vm377_vm2, %v367_v15, -inf }
 0x122   : > { %v380_v17 = vsel %vm379_vm3, %v378_v16, -inf }
 0x123   : > { %381 = vmax.xlane.f32.xlu0 %v380_v17 }
 0x196   : > { %v382_v22 = vpop.xlane.xlu0 %381 }
 0x197   : > { %v383_v23 = vsub.f32 %v378_v16, %v382_v22 }
 0x199   : > { %v384_v24 = vmul.f32 1.442695, %v383_v23 }
 0x19b   : > { %601 = vpow2.f32 %v384_v24 }
 0x1a1   : > { %v602_v25 = vpop.eup %601 }
 0x1a2   : > { %v386_v26 = vsel %vm379_vm3, %v602_v25, 0.0 }
 0x1a3   : > { %387 = vadd.xlane.f32.xlu0 %v386_v26 }
 0x216   : > { %v388_v28 = vpop.xlane.xlu0 %387 }
 0x217   : > { %603 = vrcp.f32 %v388_v28  ;;  %v400_v32 = vand.u32 2147483648, %v388_v28  ;;  %v398_v34 = vand.u32 2147483647, %v388_v28  ;;  %vm394_vm5 = vweird.f32 %v388_v28 }
 0x219   : > { %v401_v36 = vor.u32 1.1754944e-38, %v400_v32  ;;  %vm399_vm7 = vcmp.eq.f32.partialorder %v398_v34, 8.507059e+37 }
 0x21d   : > { %v604_v29 = vpop.eup %603 }
 0x21e   : > { %v390_v30 = vmul.f32 %v604_v29, %v388_v28  ;;  %vm395_vm4 = vweird.f32 %v604_v29 }
 0x21f   : > { %vm396_vm6 = vmor %vm394_vm5, %vm395_vm4 }
 0x220   : > { %v391_v31 = vsub.f32 1.0, %v390_v30 }
 0x222   : > { %v392_v33 = vmul.f32 %v604_v29, %v391_v31 }
 0x224   : > { %v393_v35 = vadd.f32 %v604_v29, %v392_v33 }
 0x226   : > { %v397_v37 = vsel %vm396_vm6, %v604_v29, %v393_v35 }
 0x227   : > { %v402_v38 = vsel %vm399_vm7, %v401_v36, %v397_v37 }
 0x228   : > { %v403_v39 = vmul.f32 %v602_v25, %v402_v38 }
 0x22a   : > { %541 = vmatmul.msk.f32.vlgmr.msrb.gmra.mxu3 %vm379_vm3, %v403_v39 }
 0x2ad   : > { %v424_v40 = vpop.f32.mrf.mxu3 }
 0x2ae   : > { %427 = vst.msk [vmem:[%s250_s15] sm:$0xff] %vm343_vm1, %v424_v40 }
 0x2af   : > { %632 = shalt.err (!%p629_p5)
}
 0x2b0   : > { %546 = dma.vmem_to_hbm [thread:$0]  (%p755_p4), %s443_s16, 128, %s445_s17, %s429_s24  }
 0x2b1 PF: > { %p552_p6 = scmp.ge.s32.totalorder %s683_s23, 2  ;;  %s456_s9 = sand.u32 1, %s663_s18  }
 0x2b2   : > { %s457_s11 = scalar_lea.sflag [#allocation3], %s456_s9 }
 0x2b3   : > { %p549_p7 = pnand %p552_p6, %p762_p8 }
 0x2b5   : > { %p550_p9 = pneg %p549_p7 }
 0x2b7   : > { %658 = dma.done.wait (%p550_p9), %s457_s11, 128  }
 0x2b8   : > { %660 = vsyncadd (%p550_p9), %s457_s11, 4294967168  ;;  %s18_s23 = sadd.s32 1, %s683_s23   ;;  %s868_s18 = smov %s667_s19 }
 0x2b9   : > { %p15_p10 = scmp.ge.s32.totalorder %s18_s23, 4   ;;  %s869_s19 = smov %s671_s20 }
 0x2ba   : > { %s870_s20 = smov %s768_s6  ;;  %s871_s21 = smov %s679_s22 }
 0x2bb   : > { %s872_s22 = smov %s874_s26  ;;  %17 = sbr.rel (!%p15_p10) target bundleno = 4 (0x4), region = 78 }
 0x2c0   :  { %463 = vsyncpa [#allocation3], 1 }
 0x2c1   :  { %465 = vsyncpa [#allocation3 + $0x1], 1 }

</bundles_post_ra>
